<compile_context>
chip_gen: v6e
topology: v6e:2x2x1
jax: 0.10.0
libtpu: 0.0.40
codegen_flags: <defaults>
</compile_context>

<pallas_src>
import math

import jax
import jax.numpy as jnp
from jax.experimental import pallas as pl
from jax.experimental.pallas import tpu as pltpu


def _round_up(x, mult):
    return ((x + mult - 1) // mult) * mult


def _cdiv(a, b):
    return -(-a // b)


# --------------------------------------------------------------------------- #
# Kernel body: one (TB, Dp) x tile  @  one (Dp, TN) W^T slab  + bias row.
# --------------------------------------------------------------------------- #
def _feature_regression_kernel(x_ref, wt_ref, b_ref, o_ref):
    z = jnp.dot(x_ref[...], wt_ref[...], preferred_element_type=jnp.float32)
    z = z + b_ref[...].astype(jnp.float32)          # (1, TN) broadcast over rows
    o_ref[...] = z.astype(o_ref.dtype)


# --------------------------------------------------------------------------- #
# Host-side sizing helpers.
# --------------------------------------------------------------------------- #
def _vmem_capacity_bytes():
    """Per-TensorCore VMEM capacity; conservative fallback if unqueryable."""
    try:
        info = pltpu.get_tpu_info()
        cap = getattr(info, "vmem_capacity_bytes", None)
        if cap:
            return int(min(int(cap), 128 << 20))
    except Exception:
        pass
    return 64 << 20  # v7x per-TC VMEM; safe lower bound for v5e / v6e too.


def _choose_tiling(B, Dp, itemsize, budget, allow_single_buffer):
    """Pick (TB, TN, w_buffers): TB multiple of 8, TN multiple of 128 dividing Dp."""
    bp8 = _round_up(max(B, 1), 8)

    # 1) W^T layout: keep it fully resident if it leaves >= half the budget for
    #    the streamed x / out tiles; otherwise stream it in column slabs.
    w_bufs_resident = 1 if allow_single_buffer else 2
    if w_bufs_resident * Dp * Dp * itemsize <= budget // 2:
        tn, w_bufs = Dp, w_bufs_resident
    else:
        tn, w_bufs = 128, 2
        for cand in (1024, 512, 256):
            if Dp % cand == 0 and 2 * Dp * cand * itemsize <= budget // 2:
                tn = cand
                break

    # 2) Batch tile: aim for ~4 MiB x tiles (amortizes the ~0.35us/step grid
    #    overhead), bounded by the remaining VMEM budget and by the batch.
    remaining = budget - w_bufs * Dp * tn * itemsize - 4 * tn * itemsize
    per_row = itemsize * (2 * Dp + 2 * tn)           # x + out, double-buffered
    tb_budget = max(8, (remaining // per_row) // 8 * 8)
    tb_target = max(8, _round_up((4 << 20) // (itemsize * Dp), 8))
    tb = max(8, min(bp8, tb_target, tb_budget))

    # 3) Keep the same number of grid steps but shrink TB to minimize padding.
    n_i = _cdiv(bp8, tb)
    tb = _round_up(_cdiv(bp8, n_i), 8)
    return tb, tn, w_bufs


# --------------------------------------------------------------------------- #
# pallas_call wrapper.
# --------------------------------------------------------------------------- #
def _pallas_forward(x, Wt, bias, B, D, Dp, tb, tn, single_buffer_w, vmem_cap):
    dtype = x.dtype
    itemsize = jnp.dtype(dtype).itemsize
    n_i = _cdiv(_round_up(B, 8), tb)
    Bp = n_i * tb
    n_j = Dp // tn
    resident = tn == Dp

    # Fast path: skip the extra HBM pad / slice passes for aligned shapes.
    needs_pad = (Bp != B) or (Dp != D)
    xp = jnp.zeros((Bp, Dp), dtype).at[:B, :D].set(x) if needs_pad else x

    # Grid-invariant params: single-buffer them when requested (and resident).
    spec_kwargs = (
        dict(pipeline_mode=pl.Buffered(1)) if (resident and single_buffer_w) else {}
    )

    # Explicit VMEM budget (per TensorCore): x + out double-buffered, W^T with
    # 1 or 2 buffers, bias negligible, plus headroom for compiler scratch.
    w_bufs = 1 if (resident and single_buffer_w) else 2
    footprint = itemsize * (2 * tb * Dp + w_bufs * Dp * tn + 2 * tb * tn + 4 * tn)
    vmem_limit = int(min(int(vmem_cap * 0.9), max(footprint + (4 << 20), 8 << 20)))

    out = pl.pallas_call(
        _feature_regression_kernel,
        out_shape=jax.ShapeDtypeStruct((Bp, Dp), dtype),
        grid_spec=pltpu.PrefetchScalarGridSpec(
            num_scalar_prefetch=0,
            grid=(n_i, n_j),
            in_specs=[
                pl.BlockSpec((tb, Dp), lambda i, j: (i, 0)),               # x
                pl.BlockSpec((Dp, tn), lambda i, j: (0, j), **spec_kwargs),  # W^T
                pl.BlockSpec((1, tn), lambda i, j: (0, j), **spec_kwargs),   # bias
            ],
            out_specs=pl.BlockSpec((tb, tn), lambda i, j: (i, j)),
        ),
        compiler_params=pltpu.CompilerParams(
            dimension_semantics=("parallel", "parallel"),
            vmem_limit_bytes=vmem_limit,
        ),
    )(xp, Wt, bias)

    return out[:B, :D] if needs_pad else out


def feature_regression(x, W, b, *, _tiling_override=None):
    """z_h = x @ (W * (1 - eye(D)))^T + b  — FeatureRegression.forward."""
    B, D = x.shape
    dtype = x.dtype
    Dp = _round_up(D, 128)
    itemsize = max(jnp.dtype(dtype).itemsize, jnp.dtype(W.dtype).itemsize)

    # Host-side parameter prep (once per call; folds into the caller's graph
    # under jit): zero the diagonal, transpose, lane-pad.  Pre-masking keeps
    # the result bit-identical to the PyTorch masked-weight linear.
    Wm_t = (W * (1.0 - jnp.eye(D, dtype=W.dtype))).T.astype(dtype)
    if D != Dp:
        Wt = jnp.zeros((Dp, Dp), dtype).at[:D, :D].set(Wm_t)
        bias = jnp.zeros((1, Dp), dtype).at[0, :D].set(b.astype(dtype))
    else:
        Wt = Wm_t
        bias = b.astype(dtype).reshape(1, Dp)

    cap = _vmem_capacity_bytes()      # per TensorCore (each TC holds its own W^T)
    budget = int(cap * 0.8)

    if _tiling_override is not None:  # testing hook for the streamed-W^T path
        tb, tn, single = _tiling_override
        return _pallas_forward(x, Wt, bias, B, D, Dp, tb, tn, single, cap)

    try:
        tb, tn, w_bufs = _choose_tiling(B, Dp, itemsize, budget,
                                        allow_single_buffer=True)
        return _pallas_forward(x, Wt, bias, B, D, Dp, tb, tn, w_bufs == 1, cap)
    except Exception:
        # Fallback for JAX builds where pl.Buffered(1) is not supported by
        # pallas_call: re-tile assuming default double-buffering and retry.
        tb, tn, _ = _choose_tiling(B, Dp, itemsize, budget,
                                   allow_single_buffer=False)
        return _pallas_forward(x, Wt, bias, B, D, Dp, tb, tn, False, cap)


# --------------------------------------------------------------------------- #
# Parameter init mirroring FeatureRegression.reset_parameters + reference.
# --------------------------------------------------------------------------- #
def make_params(input_size, key, dtype=jnp.float32):
    stdv = 1.0 / math.sqrt(input_size)
    kw, kb = jax.random.split(key)
    W = jax.random.uniform(kw, (input_size, input_size),
                           minval=-stdv, maxval=stdv, dtype=dtype)
    b = jax.random.uniform(kb, (input_size,),
                           minval=-stdv, maxval=stdv, dtype=dtype)
    return W, b


def _reference(x, W, b):
    D = W.shape[0]
    m = jnp.ones((D, D), x.dtype) - jnp.eye(D, dtype=x.dtype)
    return x @ (W * m).T + b


if __name__ == "__main__":
    key = jax.random.PRNGKey(0)
    k_x, k_p, k_x2, k_p2, k_x3, k_p3 = jax.random.split(key, 6)

    # 1) Module-spec shape (BRITS-style: small batch, small feature dim).
    batch, input_size = 8, 32
    x = jax.random.normal(k_x, (batch, input_size), dtype=jnp.float32)
    W, b = make_params(input_size, k_p)
    z_h = jax.block_until_ready(feature_regression(x, W, b))
    assert z_h.shape == (batch, input_size)
    assert jnp.allclose(z_h, _reference(x, W, b), atol=1e-5, rtol=1e-5)

    # 2) Aligned fast path (no host pad / output slice), resident W^T.
    x2 = jax.random.normal(k_x2, (16, 128), dtype=jnp.float32)
    W2, b2 = make_params(128, k_p2)
    z2 = jax.block_until_ready(feature_regression(x2, W2, b2))
    assert jnp.allclose(z2, _reference(x2, W2, b2), atol=1e-4, rtol=1e-4)

    # 3) Streamed (column-slab) W^T path — the large-D / v7x-VMEM fallback —
    #    forced at a small test size via the tiling override.
    x3 = jax.random.normal(k_x3, (16, 256), dtype=jnp.float32)
    W3, b3 = make_params(256, k_p3)
    z3 = jax.block_until_ready(
        feature_regression(x3, W3, b3, _tiling_override=(8, 128, False)))
    assert jnp.allclose(z3, _reference(x3, W3, b3), atol=1e-4, rtol=1e-4)

    # TODO(synk): at production scale, fuse this op into the surrounding RITS
    # cell kernel (or batch over time steps) instead of a standalone launch.
    print("KERNEL_OK")
</pallas_src>

<mosaic_0001>
module attributes {stable_mosaic.version = 11 : i64} {
  func.func @_feature_regression_kernel(%arg0: i32, %arg1: i32, %arg2: memref<8x128xf32, #tpu.memory_space<vmem>>, %arg3: memref<128x128xf32, #tpu.memory_space<vmem>>, %arg4: memref<1x128xf32, #tpu.memory_space<vmem>>, %arg5: memref<8x128xf32, #tpu.memory_space<vmem>>) attributes {dimension_semantics = [#tpu.dimension_semantics<parallel>, #tpu.dimension_semantics<parallel>], iteration_bounds = array<i64: 1, 1>, scalar_prefetch = 0 : i64, scratch_operands = 0 : i64, tpu.core_type = #tpu.core_type<tc>, window_params = [{transform_indices = @transform_0, window_bounds = array<i64: 8, 128>}, {pipeline_mode = #tpu.pipeline_mode<synchronous>, transform_indices = @transform_1, window_bounds = array<i64: 128, 128>}, {pipeline_mode = #tpu.pipeline_mode<synchronous>, transform_indices = @transform_2, window_bounds = array<i64: 1, 128>}, {transform_indices = @transform_3, window_bounds = array<i64: 8, 128>}]} {
    %c0 = arith.constant 0 : index
    %c0_0 = arith.constant 0 : index
    %0 = vector.load %arg2[%c0, %c0_0] : memref<8x128xf32, #tpu.memory_space<vmem>>, vector<8x128xf32>
    %c0_1 = arith.constant 0 : index
    %c0_2 = arith.constant 0 : index
    %1 = vector.load %arg3[%c0_1, %c0_2] : memref<128x128xf32, #tpu.memory_space<vmem>>, vector<128x128xf32>
    %cst = arith.constant dense<0.000000e+00> : vector<8x128xf32>
    %2 = tpu.matmul %0, %1, %cst {dimension_numbers = #tpu.dot_dimension_numbers<[1], [0], [0], [1], [0, 0, 1, 1], [], []>} : vector<8x128xf32>, vector<128x128xf32>, vector<8x128xf32> -> vector<8x128xf32>
    %c0_3 = arith.constant 0 : index
    %c0_4 = arith.constant 0 : index
    %3 = vector.load %arg4[%c0_3, %c0_4] : memref<1x128xf32, #tpu.memory_space<vmem>>, vector<1x128xf32>
    %4 = vector.broadcast %3 : vector<1x128xf32> to vector<8x128xf32>
    %5 = arith.addf %2, %4 : vector<8x128xf32>
    %c0_5 = arith.constant 0 : index
    %c0_6 = arith.constant 0 : index
    %6 = vector.load %arg5[%c0_5, %c0_6] : memref<8x128xf32, #tpu.memory_space<vmem>>, vector<8x128xf32>
    tpu.vector_store %arg5[%c0_5, %c0_6], %5 {strides = array<i32>} : memref<8x128xf32, #tpu.memory_space<vmem>>, vector<8x128xf32>,
    return
  }
  func.func @transform_0(%arg0: i32, %arg1: i32) -> (i32, i32) {
    %c0_i32 = arith.constant 0 : i32
    %c0_i32_0 = arith.constant 0 : i32
    return %arg0, %c0_i32 : i32, i32
  }
  func.func @transform_1(%arg0: i32, %arg1: i32) -> (i32, i32) {
    %c0_i32 = arith.constant 0 : i32
    %c0_i32_0 = arith.constant 0 : i32
    return %c0_i32, %arg1 : i32, i32
  }
  func.func @transform_2(%arg0: i32, %arg1: i32) -> (i32, i32) {
    %c0_i32 = arith.constant 0 : i32
    %c0_i32_0 = arith.constant 0 : i32
    return %c0_i32, %arg1 : i32, i32
  }
  func.func @transform_3(%arg0: i32, %arg1: i32) -> (i32, i32) {
    %c0_i32 = arith.constant 0 : i32
    return %arg0, %arg1 : i32, i32
  }
}

module attributes {stable_mosaic.version = 11 : i64} {
  func.func @_feature_regression_kernel(%arg0: i32, %arg1: i32, %arg2: memref<8x128xf32, #tpu.memory_space<vmem>>, %arg3: memref<128x128xf32, #tpu.memory_space<vmem>>, %arg4: memref<1x128xf32, #tpu.memory_space<vmem>>, %arg5: memref<8x128xf32, #tpu.memory_space<vmem>>) attributes {dimension_semantics = [#tpu.dimension_semantics<parallel>, #tpu.dimension_semantics<parallel>], iteration_bounds = array<i64: 1, 1>, scalar_prefetch = 0 : i64, scratch_operands = 0 : i64, tpu.core_type = #tpu.core_type<tc>, window_params = [{transform_indices = @transform_0, window_bounds = array<i64: 8, 128>}, {transform_indices = @transform_1, window_bounds = array<i64: 128, 128>}, {transform_indices = @transform_2, window_bounds = array<i64: 1, 128>}, {transform_indices = @transform_3, window_bounds = array<i64: 8, 128>}]} {
    %c0 = arith.constant 0 : index
    %c0_0 = arith.constant 0 : index
    %0 = vector.load %arg2[%c0, %c0_0] : memref<8x128xf32, #tpu.memory_space<vmem>>, vector<8x128xf32>
    %c0_1 = arith.constant 0 : index
    %c0_2 = arith.constant 0 : index
    %1 = vector.load %arg3[%c0_1, %c0_2] : memref<128x128xf32, #tpu.memory_space<vmem>>, vector<128x128xf32>
    %cst = arith.constant dense<0.000000e+00> : vector<8x128xf32>
    %2 = tpu.matmul %0, %1, %cst {dimension_numbers = #tpu.dot_dimension_numbers<[1], [0], [0], [1], [0, 0, 1, 1], [], []>} : vector<8x128xf32>, vector<128x128xf32>, vector<8x128xf32> -> vector<8x128xf32>
    %c0_3 = arith.constant 0 : index
    %c0_4 = arith.constant 0 : index
    %3 = vector.load %arg4[%c0_3, %c0_4] : memref<1x128xf32, #tpu.memory_space<vmem>>, vector<1x128xf32>
    %4 = vector.broadcast %3 : vector<1x128xf32> to vector<8x128xf32>
    %5 = arith.addf %2, %4 : vector<8x128xf32>
    %c0_5 = arith.constant 0 : index
    %c0_6 = arith.constant 0 : index
    %6 = vector.load %arg5[%c0_5, %c0_6] : memref<8x128xf32, #tpu.memory_space<vmem>>, vector<8x128xf32>
    tpu.vector_store %arg5[%c0_5, %c0_6], %5 {strides = array<i32>} : memref<8x128xf32, #tpu.memory_space<vmem>>, vector<8x128xf32>,
    return
  }
  func.func @transform_0(%arg0: i32, %arg1: i32) -> (i32, i32) {
    %c0_i32 = arith.constant 0 : i32
    %c0_i32_0 = arith.constant 0 : i32
    return %arg0, %c0_i32 : i32, i32
  }
  func.func @transform_1(%arg0: i32, %arg1: i32) -> (i32, i32) {
    %c0_i32 = arith.constant 0 : i32
    %c0_i32_0 = arith.constant 0 : i32
    return %c0_i32, %arg1 : i32, i32
  }
  func.func @transform_2(%arg0: i32, %arg1: i32) -> (i32, i32) {
    %c0_i32 = arith.constant 0 : i32
    %c0_i32_0 = arith.constant 0 : i32
    return %c0_i32, %arg1 : i32, i32
  }
  func.func @transform_3(%arg0: i32, %arg1: i32) -> (i32, i32) {
    %c0_i32 = arith.constant 0 : i32
    return %arg0, %arg1 : i32, i32
  }
}

</mosaic_0001>

<bundles_post_ra>
// kernel: tpu_custom_call.1
= control target key start
LH: loop header
LB: loop body
LE: loop exit
PB: predicated region body
PF: predicated region fallthrough
CT: control target
= control target key end

     0   :  { %8 = vsyncpa [#allocation3], 0  ;;  %s317_s0 = inlined_call_operand.hbm [shape: f32[8,128], index: 0, kind: input, shape index: {}]   ;;  %s318_s1 = inlined_call_operand.hbm [shape: f32[128,128], index: 1, kind: input, shape index: {}]   ;;  %s319_s2 = inlined_call_operand.vmem [shape: f32[1,128], index: 2, kind: input, shape index: {}]   ;;  %s320_s3 = inlined_call_operand.hbm [shape: f32[8,128], index: 3, kind: output, shape index: {}]  }
   0x1   :  { %9 = vsyncpa [#allocation6], 0 }
   0x2   :  { %10 = vsyncpa [#allocation4], 0  ;;  %s278_s12 = smov [#allocation2]   ;;  %s279_s14 = smov [#allocation5]  }
   0x3   :  { %s17_s13 = sshll.u32 %s278_s12, 4  ;;  %s26_s15 = sshll.u32 %s279_s14, 4  ;;  %s18_s13 = int_to_ptr.vmem [resolvable:$true] %s17_s13  ;;  %s27_s15 = int_to_ptr.vmem [resolvable:$true] %s26_s15 }
   0x4   :  { %s220_s16 = scalar_lea.vmem %s18_s13, 128  ;;  %p225_p1 = scmp.lt.s32.totalorder %s18_s13, %s18_s13 }
   0x5   :  { %p221_p0 = scmp.ne.s32.totalorder %s18_s13, %s220_s16  ;;  %p226_p2 = scmp.lt.s32.totalorder %s220_s16, %s220_s16 }
   0x7   :  { %p227_p3 = por %p226_p2, %p225_p1 }
   0x9   :  { %p228_p4 = pnand %p227_p3, %p221_p0 }
   0xb   :  { %231 = shalt.err (!%p228_p4)
}
   0xc   :  { %20 = dma.hbm_to_vmem [thread:$0]  %s317_s0, 128, %s18_s13, [#allocation3]  }
   0xd   :  { %s240_s19 = scalar_lea.vmem %s27_s15, 2048  ;;  %p245_p6 = scmp.lt.s32.totalorder %s27_s15, %s27_s15 }
   0xe   :  { %p241_p5 = scmp.ne.s32.totalorder %s27_s15, %s240_s19  ;;  %p246_p7 = scmp.lt.s32.totalorder %s240_s19, %s240_s19 }
  0x10   :  { %p247_p8 = por %p246_p7, %p245_p6 }
  0x12   :  { %p248_p9 = pnand %p247_p8, %p241_p5 }
  0x14   :  { %251 = shalt.err (!%p248_p9)
}
  0x15   :  { %s280_s20 = smov 128   ;;  %s281_s21 = smov 8  }
  0x16   :  { %32 = dma.hbm_to_vmem [thread:$0]  %s318_s1, 2048, %s27_s15, [#allocation6], %s280_s20, %s280_s20, %s281_s21  }
  0x17   :  { %272 = dma.done.wait [#allocation3], 128  }
  0x18   :  { %273 = vsyncadd [#allocation3], 4294967168 }
  0x19   :  { %274 = dma.done.wait [#allocation6], 2048  }
  0x1a   :  { %275 = vsyncadd [#allocation6], 4294965248  ;;  %v282_v0 = vmov 0.0   ;;  %vm283_vm0 = vmmov 0   ;;  %v57_v1 = vld [vmem:[#allocation5 + $0x78] sm:$0xff]  ;;  %v56_v2 = vld [vmem:[#allocation5 + $0x70] sm:$0xff] }
  0x1b   :  { %170 = vmatprep.subr.mxu0 %v282_v0  ;;  %202 = vmatprep.mubr.msk.f32.mxu0 %vm283_vm0, %v282_v0  ;;  %v55_v3 = vld [vmem:[#allocation5 + $0x68] sm:$0xff]  ;;  %v54_v4 = vld [vmem:[#allocation5 + $0x60] sm:$0xff]  ;;  %v53_v5 = vld [vmem:[#allocation5 + $0x58] sm:$0xff]  ;;  %s284_s24 = smov [#allocation7]  }
  0x1c   :  { %171 = vmatpush3.msra.mxu0 %v57_v1  ;;  %v52_v6 = vld [vmem:[#allocation5 + $0x50] sm:$0xff]  ;;  %v51_v7 = vld [vmem:[#allocation5 + $0x48] sm:$0xff]  ;;  %v50_v8 = vld [vmem:[#allocation5 + $0x40] sm:$0xff]  ;;  %s142_s25 = sshll.u32 %s284_s24, 4  ;;  %s143_s25 = int_to_ptr.vmem [resolvable:$true] %s142_s25 }
  0x1d   :  { %172 = vmatprep.subr.mxu0 %v282_v0  ;;  %v49_v9 = vld [vmem:[#allocation5 + $0x38] sm:$0xff]  ;;  %v48_v10 = vld [vmem:[#allocation5 + $0x30] sm:$0xff]  ;;  %v47_v11 = vld [vmem:[#allocation5 + $0x28] sm:$0xff]  ;;  %s252_s26 = scalar_lea.vmem %s143_s25, 128  ;;  %p257_p11 = scmp.lt.s32.totalorder %s143_s25, %s143_s25 }
  0x1e   :  { %173 = vmatpush3.msra.mxu0 %v56_v2  ;;  %v46_v12 = vld [vmem:[#allocation5 + $0x20] sm:$0xff]  ;;  %v45_v13 = vld [vmem:[#allocation5 + $0x18] sm:$0xff]  ;;  %v44_v14 = vld [vmem:[#allocation5 + $0x10] sm:$0xff]  ;;  %p253_p10 = scmp.ne.s32.totalorder %s143_s25, %s252_s26  ;;  %p258_p12 = scmp.lt.s32.totalorder %s252_s26, %s252_s26 }
  0x1f   :  { %174 = vmatprep.subr.mxu0 %v282_v0  ;;  %v43_v15 = vld [vmem:[#allocation5 + $0x8] sm:$0xff]  ;;  %v42_v16 = vld [vmem:[#allocation5] sm:$0xff]  ;;  %v41_v17 = vld [vmem:[#allocation2] sm:$0xff] }
  0x20   :  { %175 = vmatpush3.msra.mxu0 %v55_v3  ;;  %v152_v18 = vld [vmem:[%s319_s2] ss:$0 sm:$0xff]  ;;  %p259_p13 = por %p258_p12, %p257_p11 }
  0x21   :  { %176 = vmatprep.subr.mxu0 %v282_v0 }
  0x22   :  { %177 = vmatpush3.msra.mxu0 %v54_v4  ;;  %p260_p0 = pnand %p259_p13, %p253_p10 }
  0x23   :  { %178 = vmatprep.subr.mxu0 %v282_v0 }
  0x24   :  { %179 = vmatpush3.msra.mxu0 %v53_v5 }
  0x25   :  { %180 = vmatprep.subr.mxu0 %v282_v0 }
  0x26   :  { %181 = vmatpush3.msra.mxu0 %v52_v6 }
  0x27   :  { %182 = vmatprep.subr.mxu0 %v282_v0 }
  0x28   :  { %183 = vmatpush3.msra.mxu0 %v51_v7 }
  0x29   :  { %184 = vmatprep.subr.mxu0 %v282_v0 }
  0x2a   :  { %185 = vmatpush3.msra.mxu0 %v50_v8 }
  0x2b   :  { %186 = vmatprep.subr.mxu0 %v282_v0 }
  0x2c   :  { %187 = vmatpush3.msra.mxu0 %v49_v9 }
  0x2d   :  { %188 = vmatprep.subr.mxu0 %v282_v0 }
  0x2e   :  { %189 = vmatpush3.msra.mxu0 %v48_v10 }
  0x2f   :  { %190 = vmatprep.subr.mxu0 %v282_v0 }
  0x30   :  { %191 = vmatpush3.msra.mxu0 %v47_v11 }
  0x31   :  { %192 = vmatprep.subr.mxu0 %v282_v0 }
  0x32   :  { %193 = vmatpush3.msra.mxu0 %v46_v12 }
  0x33   :  { %194 = vmatprep.subr.mxu0 %v282_v0 }
  0x34   :  { %195 = vmatpush3.msra.mxu0 %v45_v13 }
  0x35   :  { %196 = vmatprep.subr.mxu0 %v282_v0 }
  0x36   :  { %197 = vmatpush3.msra.mxu0 %v44_v14 }
  0x37   :  { %198 = vmatprep.subr.mxu0 %v282_v0 }
  0x38   :  { %199 = vmatpush3.msra.mxu0 %v43_v15 }
  0x39   :  { %200 = vmatprep.subr.mxu0 %v282_v0 }
  0x3a   :  { %201 = vmatpush3.msra.mxu0 %v42_v16 }
  0x3b   :  { %203 = vmatmul.mubr.f32.vlgmr.msra.gmra.mxu0 %v41_v17 }
  0xfb   :  { %v131_v19 = vpop.f32.mrf.mxu0 }
  0xfc   :  { %v132_v20 = vadd.f32 %v152_v18, %v131_v19 }
  0xfd   :  { %v204_v21 = vpop.f32.mrf.mxu0 }
  0xfe   :  { %135 = vst [vmem:[#allocation7] sm:$0xff] %v132_v20 }
  0xff   :  { %263 = shalt.err (!%p260_p0)
}
 0x100   :  { %145 = dma.vmem_to_hbm [thread:$0]  %s143_s25, 128, %s320_s3, [#allocation4]  }
 0x101   :  { %276 = dma.done.wait [#allocation4], 128  }
 0x102   :  { %277 = vsyncadd [#allocation4], 4294967168 }
 0x103   :  { %149 = vsyncpa [#allocation3], 1 }
 0x104   :  { %150 = vsyncpa [#allocation6], 1 }
 0x105   :  { %151 = vsyncpa [#allocation4], 1 }

// kernel: tpu_custom_call.1
= control target key start
LH: loop header
LB: loop body
LE: loop exit
PB: predicated region body
PF: predicated region fallthrough
CT: control target
= control target key end

     0   :  { %8 = vsyncpa [#allocation3], 0  ;;  %s317_s0 = inlined_call_operand.hbm [shape: f32[8,128], index: 0, kind: input, shape index: {}]   ;;  %s318_s1 = inlined_call_operand.hbm [shape: f32[128,128], index: 1, kind: input, shape index: {}]   ;;  %s319_s2 = inlined_call_operand.vmem [shape: f32[1,128], index: 2, kind: input, shape index: {}]   ;;  %s320_s3 = inlined_call_operand.hbm [shape: f32[8,128], index: 3, kind: output, shape index: {}]  }
   0x1   :  { %9 = vsyncpa [#allocation6], 0 }
   0x2   :  { %10 = vsyncpa [#allocation4], 0  ;;  %s278_s12 = smov [#allocation2]   ;;  %s279_s14 = smov [#allocation5]  }
   0x3   :  { %s17_s13 = sshll.u32 %s278_s12, 4  ;;  %s26_s15 = sshll.u32 %s279_s14, 4  ;;  %s18_s13 = int_to_ptr.vmem [resolvable:$true] %s17_s13  ;;  %s27_s15 = int_to_ptr.vmem [resolvable:$true] %s26_s15 }
   0x4   :  { %s220_s16 = scalar_lea.vmem %s18_s13, 128  ;;  %p225_p1 = scmp.lt.s32.totalorder %s18_s13, %s18_s13 }
   0x5   :  { %p221_p0 = scmp.ne.s32.totalorder %s18_s13, %s220_s16  ;;  %p226_p2 = scmp.lt.s32.totalorder %s220_s16, %s220_s16 }
   0x7   :  { %p227_p3 = por %p226_p2, %p225_p1 }
   0x9   :  { %p228_p4 = pnand %p227_p3, %p221_p0 }
   0xb   :  { %231 = shalt.err (!%p228_p4)
}
   0xc   :  { %20 = dma.hbm_to_vmem [thread:$0]  %s317_s0, 128, %s18_s13, [#allocation3]  }
   0xd   :  { %s240_s19 = scalar_lea.vmem %s27_s15, 2048  ;;  %p245_p6 = scmp.lt.s32.totalorder %s27_s15, %s27_s15 }
   0xe   :  { %p241_p5 = scmp.ne.s32.totalorder %s27_s15, %s240_s19  ;;  %p246_p7 = scmp.lt.s32.totalorder %s240_s19, %s240_s19 }
  0x10   :  { %p247_p8 = por %p246_p7, %p245_p6 }
  0x12   :  { %p248_p9 = pnand %p247_p8, %p241_p5 }
  0x14   :  { %251 = shalt.err (!%p248_p9)
}
  0x15   :  { %s280_s20 = smov 128   ;;  %s281_s21 = smov 8  }
  0x16   :  { %32 = dma.hbm_to_vmem [thread:$0]  %s318_s1, 2048, %s27_s15, [#allocation6], %s280_s20, %s280_s20, %s281_s21  }
  0x17   :  { %272 = dma.done.wait [#allocation3], 128  }
  0x18   :  { %273 = vsyncadd [#allocation3], 4294967168 }
  0x19   :  { %274 = dma.done.wait [#allocation6], 2048  }
  0x1a   :  { %275 = vsyncadd [#allocation6], 4294965248  ;;  %v282_v0 = vmov 0.0   ;;  %vm283_vm0 = vmmov 0   ;;  %v57_v1 = vld [vmem:[#allocation5 + $0x78] sm:$0xff]  ;;  %v56_v2 = vld [vmem:[#allocation5 + $0x70] sm:$0xff] }
  0x1b   :  { %170 = vmatprep.subr.mxu0 %v282_v0  ;;  %202 = vmatprep.mubr.msk.f32.mxu0 %vm283_vm0, %v282_v0  ;;  %v55_v3 = vld [vmem:[#allocation5 + $0x68] sm:$0xff]  ;;  %v54_v4 = vld [vmem:[#allocation5 + $0x60] sm:$0xff]  ;;  %v53_v5 = vld [vmem:[#allocation5 + $0x58] sm:$0xff]  ;;  %s284_s24 = smov [#allocation7]  }
  0x1c   :  { %171 = vmatpush3.msra.mxu0 %v57_v1  ;;  %v52_v6 = vld [vmem:[#allocation5 + $0x50] sm:$0xff]  ;;  %v51_v7 = vld [vmem:[#allocation5 + $0x48] sm:$0xff]  ;;  %v50_v8 = vld [vmem:[#allocation5 + $0x40] sm:$0xff]  ;;  %s142_s25 = sshll.u32 %s284_s24, 4  ;;  %s143_s25 = int_to_ptr.vmem [resolvable:$true] %s142_s25 }
  0x1d   :  { %172 = vmatprep.subr.mxu0 %v282_v0  ;;  %v49_v9 = vld [vmem:[#allocation5 + $0x38] sm:$0xff]  ;;  %v48_v10 = vld [vmem:[#allocation5 + $0x30] sm:$0xff]  ;;  %v47_v11 = vld [vmem:[#allocation5 + $0x28] sm:$0xff]  ;;  %s252_s26 = scalar_lea.vmem %s143_s25, 128  ;;  %p257_p11 = scmp.lt.s32.totalorder %s143_s25, %s143_s25 }
  0x1e   :  { %173 = vmatpush3.msra.mxu0 %v56_v2  ;;  %v46_v12 = vld [vmem:[#allocation5 + $0x20] sm:$0xff]  ;;  %v45_v13 = vld [vmem:[#allocation5 + $0x18] sm:$0xff]  ;;  %v44_v14 = vld [vmem:[#allocation5 + $0x10] sm:$0xff]  ;;  %p253_p10 = scmp.ne.s32.totalorder %s143_s25, %s252_s26  ;;  %p258_p12 = scmp.lt.s32.totalorder %s252_s26, %s252_s26 }
  0x1f   :  { %174 = vmatprep.subr.mxu0 %v282_v0  ;;  %v43_v15 = vld [vmem:[#allocation5 + $0x8] sm:$0xff]  ;;  %v42_v16 = vld [vmem:[#allocation5] sm:$0xff]  ;;  %v41_v17 = vld [vmem:[#allocation2] sm:$0xff] }
  0x20   :  { %175 = vmatpush3.msra.mxu0 %v55_v3  ;;  %v152_v18 = vld [vmem:[%s319_s2] ss:$0 sm:$0xff]  ;;  %p259_p13 = por %p258_p12, %p257_p11 }
  0x21   :  { %176 = vmatprep.subr.mxu0 %v282_v0 }
  0x22   :  { %177 = vmatpush3.msra.mxu0 %v54_v4  ;;  %p260_p0 = pnand %p259_p13, %p253_p10 }
  0x23   :  { %178 = vmatprep.subr.mxu0 %v282_v0 }
  0x24   :  { %179 = vmatpush3.msra.mxu0 %v53_v5 }
  0x25   :  { %180 = vmatprep.subr.mxu0 %v282_v0 }
  0x26   :  { %181 = vmatpush3.msra.mxu0 %v52_v6 }
  0x27   :  { %182 = vmatprep.subr.mxu0 %v282_v0 }
  0x28   :  { %183 = vmatpush3.msra.mxu0 %v51_v7 }
  0x29   :  { %184 = vmatprep.subr.mxu0 %v282_v0 }
  0x2a   :  { %185 = vmatpush3.msra.mxu0 %v50_v8 }
  0x2b   :  { %186 = vmatprep.subr.mxu0 %v282_v0 }
  0x2c   :  { %187 = vmatpush3.msra.mxu0 %v49_v9 }
  0x2d   :  { %188 = vmatprep.subr.mxu0 %v282_v0 }
  0x2e   :  { %189 = vmatpush3.msra.mxu0 %v48_v10 }
  0x2f   :  { %190 = vmatprep.subr.mxu0 %v282_v0 }
  0x30   :  { %191 = vmatpush3.msra.mxu0 %v47_v11 }
  0x31   :  { %192 = vmatprep.subr.mxu0 %v282_v0 }
  0x32   :  { %193 = vmatpush3.msra.mxu0 %v46_v12 }
  0x33   :  { %194 = vmatprep.subr.mxu0 %v282_v0 }
  0x34   :  { %195 = vmatpush3.msra.mxu0 %v45_v13 }
  0x35   :  { %196 = vmatprep.subr.mxu0 %v282_v0 }
  0x36   :  { %197 = vmatpush3.msra.mxu0 %v44_v14 }
  0x37   :  { %198 = vmatprep.subr.mxu0 %v282_v0 }
  0x38   :  { %199 = vmatpush3.msra.mxu0 %v43_v15 }
  0x39   :  { %200 = vmatprep.subr.mxu0 %v282_v0 }
  0x3a   :  { %201 = vmatpush3.msra.mxu0 %v42_v16 }
  0x3b   :  { %203 = vmatmul.mubr.f32.vlgmr.msra.gmra.mxu0 %v41_v17 }
  0xfb   :  { %v131_v19 = vpop.f32.mrf.mxu0 }
  0xfc   :  { %v132_v20 = vadd.f32 %v152_v18, %v131_v19 }
  0xfd   :  { %v204_v21 = vpop.f32.mrf.mxu0 }
  0xfe   :  { %135 = vst [vmem:[#allocation7] sm:$0xff] %v132_v20 }
  0xff   :  { %263 = shalt.err (!%p260_p0)
}
 0x100   :  { %145 = dma.vmem_to_hbm [thread:$0]  %s143_s25, 128, %s320_s3, [#allocation4]  }
 0x101   :  { %276 = dma.done.wait [#allocation4], 128  }
 0x102   :  { %277 = vsyncadd [#allocation4], 4294967168 }
 0x103   :  { %149 = vsyncpa [#allocation3], 1 }
 0x104   :  { %150 = vsyncpa [#allocation6], 1 }
 0x105   :  { %151 = vsyncpa [#allocation4], 1 }

</bundles_post_ra>
